<compile_context>
chip_gen: v5e
topology: v5e:2x2
jax: 0.10.0
libtpu: 0.0.40
codegen_flags: <defaults>
</compile_context>

<pallas_src>
import functools
from typing import NamedTuple, Tuple

import jax
import jax.numpy as jnp
from jax.experimental import pallas as pl
from jax.experimental.pallas import tpu as pltpu


def _rup(x, m):
    return ((x + m - 1) // m) * m


# ----------------------------------------------------------------------------
# Static slab layout (shared by the one-time packer and the kernel)
# ----------------------------------------------------------------------------
class DecoderLayout(NamedTuple):
    E: int
    H: int
    L: int
    O: int
    LW: int          # lane width of slab A
    O_pad: int       # lane width of slab B (fc_out)
    o_emb: int       # embedding table rows
    o_wah: int       # W_attn (hidden part), pre-transposed
    o_wae: int       # W_attn (encoder part), pre-transposed
    o_v: int         # v as a column (column 0)
    o_w0: int        # fused layer-0 LSTM weight rows [Wih_e; Wih_a; Whh]
    o_wl: Tuple[int, ...]  # fused layer>=1 LSTM weight rows [Wih; Whh]
    o_bias: int      # bias rows: [b_attn, b_lstm0, b_lstm1, ...]
    rows_a: int
    o_bfc: int       # fc bias row inside slab B
    rows_b: int


def make_layout(E, H, L, O):
    LW = _rup(max(4 * H, E), 128)
    O_pad = _rup(O, 128)
    off = 0
    o_emb = off; off += _rup(O, 8)
    o_wah = off; off += _rup(H, 8)
    o_wae = off; off += _rup(2 * H, 8)
    o_v = off; off += _rup(H, 8)
    o_w0 = off; off += _rup(E + 3 * H, 8)
    o_wl = []
    for _ in range(1, L):
        o_wl.append(off)
        off += _rup(2 * H, 8)
    o_bias = off; off += _rup(1 + L, 8)
    rows_a = off
    o_bfc = _rup(3 * H + E, 8)
    rows_b = o_bfc + 8
    return DecoderLayout(E, H, L, O, LW, O_pad, o_emb, o_wah, o_wae, o_v, o_w0,
                         tuple(o_wl), o_bias, rows_a, o_bfc, rows_b)


# ----------------------------------------------------------------------------
# One-time parameter packing (all transposes / pads / splits hoisted here)
# ----------------------------------------------------------------------------
def pack_decoder_params(params, layout):
    lt = layout
    f32 = jnp.float32
    E, H, L, O = lt.E, lt.H, lt.L, lt.O

    A = jnp.zeros((lt.rows_a, lt.LW), f32)
    A = A.at[lt.o_emb:lt.o_emb + O, :E].set(params["embedding"].astype(f32))
    A = A.at[lt.o_wah:lt.o_wah + H, :H].set(params["W_attn"][:, :H].T)
    A = A.at[lt.o_wae:lt.o_wae + 2 * H, :H].set(params["W_attn"][:, H:].T)
    A = A.at[lt.o_v:lt.o_v + H, 0].set(params["v"])
    W_ih0, W_hh0 = params["W_ih0"], params["W_hh0"]
    W0 = jnp.concatenate([W_ih0[:, :E].T, W_ih0[:, E:].T, W_hh0.T], axis=0)
    A = A.at[lt.o_w0:lt.o_w0 + E + 3 * H, :4 * H].set(W0)
    for i, l in enumerate(range(1, L)):
        Wl = jnp.concatenate([params[f"W_ih{l}"].T, params[f"W_hh{l}"].T], axis=0)
        A = A.at[lt.o_wl[i]:lt.o_wl[i] + 2 * H, :4 * H].set(Wl)
    A = A.at[lt.o_bias, :H].set(params["b_attn"])
    for l in range(L):
        A = A.at[lt.o_bias + 1 + l, :4 * H].set(params[f"b_ih{l}"] + params[f"b_hh{l}"])

    Bm = jnp.zeros((lt.rows_b, lt.O_pad), f32)
    Bm = Bm.at[:3 * H + E, :lt.O].set(params["W_fc"].T)
    Bm = Bm.at[lt.o_bfc, :lt.O].set(params["b_fc"])
    return {"slab_a": A, "slab_b": Bm}


# ----------------------------------------------------------------------------
# Pallas kernel
# ----------------------------------------------------------------------------
def make_decoder_kernel(lt, B, S):
    E, H, L, O, LW = lt.E, lt.H, lt.L, lt.O, lt.LW
    f32 = jnp.float32

    def kernel(tok_ref, h_ref, c_ref, enc_ref, sa_ref, sb_ref,
               pred_ref, hout_ref, cout_ref):
        # Recurrent state read fully up front (outputs alias the input HBM buffers,
        # so no write can ever race a read even under refactoring).
        h_all = h_ref[...]                         # [L, B, H]
        c_all = c_ref[...]                         # [L, B, H]

        # ---- embedding lookup: one-hot @ table on the MXU (table lives in slab A) --
        tok = tok_ref[...]                         # [B, 1] int32
        ids = jax.lax.broadcasted_iota(jnp.int32, (B, O), 1)
        onehot = jnp.where(tok == ids, 1.0, 0.0).astype(f32)          # [B, O]
        table = sa_ref[pl.ds(lt.o_emb, O), :]                         # [O, LW]
        emb = jnp.dot(onehot, table, preferred_element_type=f32)[:, :E]  # [B, E]
        # dropout p=0 -> identity

        # ---- additive (Bahdanau) attention ----------------------------------------
        h_top = h_all[L - 1]                                          # [B, H]
        Wa_h = sa_ref[pl.ds(lt.o_wah, H), :]                          # [H, LW]
        Wa_e = sa_ref[pl.ds(lt.o_wae, 2 * H), :]                      # [2H, LW]
        ba = sa_ref[pl.ds(lt.o_bias, 1), :]                           # [1, LW]
        v_col = sa_ref[pl.ds(lt.o_v, H), :]                           # [H, LW] (col 0 = v)

        enc3 = enc_ref[...]                                           # [S, B, 2H]
        enc2 = enc3.reshape(S * B, 2 * H)                             # leading-dim collapse

        hid_part = jnp.dot(h_top, Wa_h, preferred_element_type=f32)   # [B, LW]
        enc_part = jnp.dot(enc2, Wa_e, preferred_element_type=f32)    # [S*B, LW]
        # broadcast hid_part across the S source positions (no S-fold replication)
        energy = jnp.tanh(enc_part.reshape(S, B, LW) + hid_part + ba)  # [S, B, LW]
        scores = jnp.dot(energy.reshape(S * B, LW)[:, :H], v_col,
                         preferred_element_type=f32)[:, 0:1]          # [S*B, 1]
        scores = scores.reshape(S, B, 1)

        m = jnp.max(scores, axis=0, keepdims=True)                    # [1, B, 1]
        ex = jnp.exp(scores - m)                                      # [S, B, 1]
        attn_w = ex / jnp.sum(ex, axis=0)                             # exact softmax
        attn = jnp.sum(attn_w * enc3, axis=0)                         # [B, 2H]

        # ---- one LSTM time-step through all layers ---------------------------------
        x = emb
        for l in range(L):
            h_prev = h_all[l]                                         # [B, H]
            c_prev = c_all[l]                                         # [B, H]
            b_l = sa_ref[pl.ds(lt.o_bias + 1 + l, 1), :]              # [1, LW]
            if l == 0:
                W_e = sa_ref[pl.ds(lt.o_w0, E), :]                    # [E,  LW]
                W_a = sa_ref[pl.ds(lt.o_w0 + E, 2 * H), :]            # [2H, LW]
                W_h = sa_ref[pl.ds(lt.o_w0 + E + 2 * H, H), :]        # [H,  LW]
                # chained accumulation: one expression per block (MRB-accumulated on v7x)
                gates = (jnp.dot(emb, W_e, preferred_element_type=f32)
                         + jnp.dot(attn, W_a, preferred_element_type=f32)
                         + jnp.dot(h_prev, W_h, preferred_element_type=f32)
                         + b_l)
            else:
                o_l = lt.o_wl[l - 1]
                W_x = sa_ref[pl.ds(o_l, H), :]                        # [H, LW]
                W_h = sa_ref[pl.ds(o_l + H, H), :]                    # [H, LW]
                gates = (jnp.dot(x, W_x, preferred_element_type=f32)
                         + jnp.dot(h_prev, W_h, preferred_element_type=f32)
                         + b_l)
            # full-vreg activations (2 EUP pushes per layer), then quarter-lane slices
            sig = jax.nn.sigmoid(gates)
            tnh = jnp.tanh(gates)
            i_g = sig[:, 0 * H:1 * H]
            f_g = sig[:, 1 * H:2 * H]
            g_g = tnh[:, 2 * H:3 * H]
            o_g = sig[:, 3 * H:4 * H]
            c_new = f_g * c_prev + i_g * g_g
            h_new = o_g * jnp.tanh(c_new)
            hout_ref[l] = h_new
            cout_ref[l] = c_new
            x = h_new                                # inter-layer dropout p=0 -> identity

        # ---- fc_out over concat(output, attention_applied, embedded) ---------------
        Wf_h = sb_ref[pl.ds(0, H), :]                                 # [H,  O_pad]
        Wf_a = sb_ref[pl.ds(H, 2 * H), :]                             # [2H, O_pad]
        Wf_e = sb_ref[pl.ds(3 * H, E), :]                             # [E,  O_pad]
        bf = sb_ref[pl.ds(lt.o_bfc, 1), :]                            # [1,  O_pad]
        pred_ref[...] = (jnp.dot(x, Wf_h, preferred_element_type=f32)
                         + jnp.dot(attn, Wf_a, preferred_element_type=f32)
                         + jnp.dot(emb, Wf_e, preferred_element_type=f32)
                         + bf)

    return kernel


# ----------------------------------------------------------------------------
# Per-step wrapper (no weight transposes/pads here — only the pallas_call)
# ----------------------------------------------------------------------------
@functools.partial(jax.jit, static_argnames=("layout",))
def decoder_lstm_forward(tokens, hidden, cell, encoder_outputs, packed, *, layout):
    lt = layout
    B = tokens.shape[0]
    S = encoder_outputs.shape[0]
    tok2 = tokens.reshape(B, 1).astype(jnp.int32)

    vmem = pl.BlockSpec(memory_space=pltpu.MemorySpace.VMEM)
    out_shape = (
        jax.ShapeDtypeStruct((B, lt.O_pad), jnp.float32),
        jax.ShapeDtypeStruct((lt.L, B, lt.H), jnp.float32),
        jax.ShapeDtypeStruct((lt.L, B, lt.H), jnp.float32),
    )
    pred_pad, h_out, c_out = pl.pallas_call(
        make_decoder_kernel(lt, B, S),
        out_shape=out_shape,
        in_specs=[vmem] * 6,
        out_specs=(vmem, vmem, vmem),
        input_output_aliases={1: 1, 2: 2},   # hidden -> h_out, cell -> c_out in place
    )(tok2, hidden, cell, encoder_outputs, packed["slab_a"], packed["slab_b"])
    return pred_pad[:, :lt.O], h_out, c_out


# ----------------------------------------------------------------------------
# Pure-JAX reference (mirrors the PyTorch forward exactly, eval mode)
# ----------------------------------------------------------------------------
def decoder_lstm_reference(tokens, hidden, cell, encoder_outputs, params, L):
    H = hidden.shape[-1]
    S = encoder_outputs.shape[0]
    emb = params["embedding"][tokens]                                   # [B, E]
    h_last = hidden[-1]                                                 # [B, H]
    enc_bf = jnp.transpose(encoder_outputs, (1, 0, 2))                  # [B, S, 2H]
    hid_rep = jnp.repeat(h_last[:, None, :], S, axis=1)                 # [B, S, H]
    cat = jnp.concatenate([hid_rep, enc_bf], axis=2)                    # [B, S, 3H]
    energy = jnp.tanh(cat @ params["W_attn"].T + params["b_attn"])
    scores = energy @ params["v"]                                       # [B, S]
    a = jax.nn.softmax(scores, axis=1)
    attn_applied = jnp.einsum("bs,bsh->bh", a, enc_bf)                  # [B, 2H]
    x = jnp.concatenate([emb, attn_applied], axis=1)                    # [B, E+2H]
    hs, cs = [], []
    for l in range(L):
        gates = (x @ params[f"W_ih{l}"].T + params[f"b_ih{l}"]
                 + hidden[l] @ params[f"W_hh{l}"].T + params[f"b_hh{l}"])
        i_g = jax.nn.sigmoid(gates[:, 0 * H:1 * H])
        f_g = jax.nn.sigmoid(gates[:, 1 * H:2 * H])
        g_g = jnp.tanh(gates[:, 2 * H:3 * H])
        o_g = jax.nn.sigmoid(gates[:, 3 * H:4 * H])
        c_new = f_g * cell[l] + i_g * g_g
        h_new = o_g * jnp.tanh(c_new)
        hs.append(h_new)
        cs.append(c_new)
        x = h_new
    out = jnp.concatenate([x, attn_applied, emb], axis=1)               # [B, 3H+E]
    pred = out @ params["W_fc"].T + params["b_fc"]
    return pred, jnp.stack(hs), jnp.stack(cs)


# ----------------------------------------------------------------------------
# Main
# ----------------------------------------------------------------------------
if __name__ == "__main__":
    OUTPUT_DIM = 64   # vocab / prediction size
    EMB_DIM = 16
    HIDDEN_DIM = 32
    NUM_LAYERS = 2
    BATCH = 8         # f32 sublane width -> better MXU row utilization
    SRC_LEN = 8
    # dropout = 0.0 (eval-mode identity)

    key = jax.random.PRNGKey(0)
    ks = list(jax.random.split(key, 24))
    k = iter(ks)
    init = lambda kk, shape: (0.1 * jax.random.normal(kk, shape, dtype=jnp.float32))

    params = {
        "embedding": init(next(k), (OUTPUT_DIM, EMB_DIM)),
        # attention: Linear(H*3 -> H) then v: Linear(H -> 1, no bias)
        "W_attn": init(next(k), (HIDDEN_DIM, 3 * HIDDEN_DIM)),
        "b_attn": init(next(k), (HIDDEN_DIM,)),
        "v": init(next(k), (HIDDEN_DIM,)),
        # fc_out: Linear(H*3 + E -> OUTPUT_DIM)
        "W_fc": init(next(k), (OUTPUT_DIM, 3 * HIDDEN_DIM + EMB_DIM)),
        "b_fc": init(next(k), (OUTPUT_DIM,)),
    }
    for l in range(NUM_LAYERS):
        in_dim = (2 * HIDDEN_DIM + EMB_DIM) if l == 0 else HIDDEN_DIM
        params[f"W_ih{l}"] = init(next(k), (4 * HIDDEN_DIM, in_dim))
        params[f"W_hh{l}"] = init(next(k), (4 * HIDDEN_DIM, HIDDEN_DIM))
        params[f"b_ih{l}"] = init(next(k), (4 * HIDDEN_DIM,))
        params[f"b_hh{l}"] = init(next(k), (4 * HIDDEN_DIM,))
    # attn_combine / hidden_transform exist in __init__ but are unused in forward.

    tokens = jax.random.randint(next(k), (BATCH,), 0, OUTPUT_DIM, dtype=jnp.int32)
    hidden = init(next(k), (NUM_LAYERS, BATCH, HIDDEN_DIM))
    cell = init(next(k), (NUM_LAYERS, BATCH, HIDDEN_DIM))
    encoder_outputs = init(next(k), (SRC_LEN, BATCH, 2 * HIDDEN_DIM))

    # One-time packing into kernel-layout slabs (hoisted out of the per-step path).
    layout = make_layout(EMB_DIM, HIDDEN_DIM, NUM_LAYERS, OUTPUT_DIM)
    packed = jax.tree_util.tree_map(jax.block_until_ready,
                                    pack_decoder_params(params, layout))

    pred, h_out, c_out = decoder_lstm_forward(
        tokens, hidden, cell, encoder_outputs, packed, layout=layout)
    jax.block_until_ready((pred, h_out, c_out))

    pred_ref, h_ref, c_ref = decoder_lstm_reference(
        tokens, hidden, cell, encoder_outputs, params, NUM_LAYERS)

    assert pred.shape == (BATCH, OUTPUT_DIM)
    assert h_out.shape == (NUM_LAYERS, BATCH, HIDDEN_DIM)
    assert c_out.shape == (NUM_LAYERS, BATCH, HIDDEN_DIM)
    assert jnp.allclose(pred, pred_ref, atol=2e-3, rtol=2e-3)
    assert jnp.allclose(h_out, h_ref, atol=2e-3, rtol=2e-3)
    assert jnp.allclose(c_out, c_ref, atol=2e-3, rtol=2e-3)

    print("KERNEL_OK")
</pallas_src>

<mosaic_0001>
module attributes {stable_mosaic.version = 11 : i64} {
  func.func @kernel(%arg0: memref<8x1xi32, #tpu.memory_space<vmem>>, %arg1: memref<2x8x32xf32, #tpu.memory_space<vmem>>, %arg2: memref<2x8x32xf32, #tpu.memory_space<vmem>>, %arg3: memref<8x8x64xf32, #tpu.memory_space<vmem>>, %arg4: memref<376x128xf32, #tpu.memory_space<vmem>>, %arg5: memref<120x128xf32, #tpu.memory_space<vmem>>, %arg6: memref<8x128xf32, #tpu.memory_space<vmem>>, %arg7: memref<2x8x32xf32, #tpu.memory_space<vmem>>, %arg8: memref<2x8x32xf32, #tpu.memory_space<vmem>>) attributes {dimension_semantics = [], scalar_prefetch = 0 : i64, scratch_operands = 0 : i64, tpu.core_type = #tpu.core_type<tc>} {
    %c0 = arith.constant 0 : index
    %c0_0 = arith.constant 0 : index
    %c0_1 = arith.constant 0 : index
    %0 = vector.load %arg1[%c0, %c0_0, %c0_1] : memref<2x8x32xf32, #tpu.memory_space<vmem>>, vector<2x8x32xf32>
    %c0_2 = arith.constant 0 : index
    %c0_3 = arith.constant 0 : index
    %c0_4 = arith.constant 0 : index
    %1 = vector.load %arg2[%c0_2, %c0_3, %c0_4] : memref<2x8x32xf32, #tpu.memory_space<vmem>>, vector<2x8x32xf32>
    %c0_5 = arith.constant 0 : index
    %c0_6 = arith.constant 0 : index
    %2 = vector.load %arg0[%c0_5, %c0_6] : memref<8x1xi32, #tpu.memory_space<vmem>>, vector<8x1xi32>
    %3 = tpu.iota {dimensions = array<i32: 1>} : vector<8x64xi32>
    %4 = vector.broadcast %2 : vector<8x1xi32> to vector<8x64xi32>
    %5 = arith.cmpi eq, %4, %3 : vector<8x64xi32>
    %cst = arith.constant 1.000000e+00 : f32
    %cst_7 = arith.constant 0.000000e+00 : f32
    %6 = vector.broadcast %cst : f32 to vector<8x64xf32>
    %7 = vector.broadcast %cst_7 : f32 to vector<8x64xf32>
    %8 = arith.select %5, %6, %7 : vector<8x64xi1>, vector<8x64xf32>
    %c0_8 = arith.constant 0 : index
    %c0_9 = arith.constant 0 : index
    %9 = vector.load %arg4[%c0_8, %c0_9] : memref<376x128xf32, #tpu.memory_space<vmem>>, vector<64x128xf32>
    %cst_10 = arith.constant dense<0.000000e+00> : vector<8x128xf32>
    %10 = tpu.matmul %8, %9, %cst_10 {dimension_numbers = #tpu.dot_dimension_numbers<[1], [0], [0], [1], [0, 0, 1, 1], [], []>} : vector<8x64xf32>, vector<64x128xf32>, vector<8x128xf32> -> vector<8x128xf32>
    %11 = vector.extract_strided_slice %10 {offsets = [0, 0], sizes = [8, 16], strides = [1, 1]} : vector<8x128xf32> to vector<8x16xf32>
    %12 = vector.extract_strided_slice %0 {offsets = [1, 0, 0], sizes = [1, 8, 32], strides = [1, 1, 1]} : vector<2x8x32xf32> to vector<1x8x32xf32>
    %13 = vector.shape_cast %12 : vector<1x8x32xf32> to vector<8x32xf32>
    %c64 = arith.constant 64 : index
    %c0_11 = arith.constant 0 : index
    %14 = vector.load %arg4[%c64, %c0_11] : memref<376x128xf32, #tpu.memory_space<vmem>>, vector<32x128xf32>
    %c96 = arith.constant 96 : index
    %c0_12 = arith.constant 0 : index
    %15 = vector.load %arg4[%c96, %c0_12] : memref<376x128xf32, #tpu.memory_space<vmem>>, vector<64x128xf32>
    %c368 = arith.constant 368 : index
    %c0_13 = arith.constant 0 : index
    %16 = vector.load %arg4[%c368, %c0_13] : memref<376x128xf32, #tpu.memory_space<vmem>>, vector<1x128xf32>
    %c160 = arith.constant 160 : index
    %c0_14 = arith.constant 0 : index
    %17 = vector.load %arg4[%c160, %c0_14] : memref<376x128xf32, #tpu.memory_space<vmem>>, vector<32x128xf32>
    %c0_15 = arith.constant 0 : index
    %c0_16 = arith.constant 0 : index
    %c0_17 = arith.constant 0 : index
    %18 = vector.load %arg3[%c0_15, %c0_16, %c0_17] : memref<8x8x64xf32, #tpu.memory_space<vmem>>, vector<8x8x64xf32>
    %19 = vector.shape_cast %18 : vector<8x8x64xf32> to vector<64x64xf32>
    %cst_18 = arith.constant dense<0.000000e+00> : vector<8x128xf32>
    %20 = tpu.matmul %13, %14, %cst_18 {dimension_numbers = #tpu.dot_dimension_numbers<[1], [0], [0], [1], [0, 0, 1, 1], [], []>} : vector<8x32xf32>, vector<32x128xf32>, vector<8x128xf32> -> vector<8x128xf32>
    %cst_19 = arith.constant dense<0.000000e+00> : vector<64x128xf32>
    %21 = tpu.matmul %19, %15, %cst_19 {dimension_numbers = #tpu.dot_dimension_numbers<[1], [0], [0], [1], [0, 0, 1, 1], [], []>} : vector<64x64xf32>, vector<64x128xf32>, vector<64x128xf32> -> vector<64x128xf32>
    %22 = vector.shape_cast %21 : vector<64x128xf32> to vector<8x8x128xf32>
    %23 = vector.shape_cast %20 : vector<8x128xf32> to vector<1x8x128xf32>
    %24 = vector.broadcast %23 : vector<1x8x128xf32> to vector<8x8x128xf32>
    %25 = arith.addf %22, %24 : vector<8x8x128xf32>
    %26 = vector.shape_cast %16 : vector<1x128xf32> to vector<1x1x128xf32>
    %27 = vector.broadcast %26 : vector<1x1x128xf32> to vector<8x8x128xf32>
    %28 = arith.addf %25, %27 : vector<8x8x128xf32>
    %29 = math.tanh %28 : vector<8x8x128xf32>
    %30 = vector.shape_cast %29 : vector<8x8x128xf32> to vector<64x128xf32>
    %31 = vector.extract_strided_slice %30 {offsets = [0, 0], sizes = [64, 32], strides = [1, 1]} : vector<64x128xf32> to vector<64x32xf32>
    %cst_20 = arith.constant dense<0.000000e+00> : vector<64x128xf32>
    %32 = tpu.matmul %31, %17, %cst_20 {dimension_numbers = #tpu.dot_dimension_numbers<[1], [0], [0], [1], [0, 0, 1, 1], [], []>} : vector<64x32xf32>, vector<32x128xf32>, vector<64x128xf32> -> vector<64x128xf32>
    %33 = vector.extract_strided_slice %32 {offsets = [0, 0], sizes = [64, 1], strides = [1, 1]} : vector<64x128xf32> to vector<64x1xf32>
    %34 = vector.shape_cast %33 : vector<64x1xf32> to vector<8x8x1xf32>
    %cst_21 = arith.constant dense<0xFF800000> : vector<8x1xf32>
    %35 = vector.multi_reduction <maximumf>, %34, %cst_21 [0] : vector<8x8x1xf32> to vector<8x1xf32>
    %36 = vector.shape_cast %35 : vector<8x1xf32> to vector<1x8x1xf32>
    %37 = vector.broadcast %36 : vector<1x8x1xf32> to vector<8x8x1xf32>
    %38 = arith.subf %34, %37 : vector<8x8x1xf32>
    %39 = math.exp %38 : vector<8x8x1xf32>
    %cst_22 = arith.constant dense<0.000000e+00> : vector<8x1xf32>
    %40 = vector.multi_reduction <add>, %39, %cst_22 [0] : vector<8x8x1xf32> to vector<8x1xf32>
    %41 = vector.shape_cast %40 : vector<8x1xf32> to vector<1x8x1xf32>
    %42 = vector.broadcast %41 : vector<1x8x1xf32> to vector<8x8x1xf32>
    %43 = arith.divf %39, %42 : vector<8x8x1xf32>
    %44 = vector.broadcast %43 : vector<8x8x1xf32> to vector<8x8x64xf32>
    %45 = arith.mulf %44, %18 : vector<8x8x64xf32>
    %cst_23 = arith.constant dense<0.000000e+00> : vector<8x64xf32>
    %46 = vector.multi_reduction <add>, %45, %cst_23 [0] : vector<8x8x64xf32> to vector<8x64xf32>
    %47 = vector.extract_strided_slice %0 {offsets = [0, 0, 0], sizes = [1, 8, 32], strides = [1, 1, 1]} : vector<2x8x32xf32> to vector<1x8x32xf32>
    %48 = vector.shape_cast %47 : vector<1x8x32xf32> to vector<8x32xf32>
    %49 = vector.extract_strided_slice %1 {offsets = [0, 0, 0], sizes = [1, 8, 32], strides = [1, 1, 1]} : vector<2x8x32xf32> to vector<1x8x32xf32>
    %50 = vector.shape_cast %49 : vector<1x8x32xf32> to vector<8x32xf32>
    %c369 = arith.constant 369 : index
    %c0_24 = arith.constant 0 : index
    %51 = vector.load %arg4[%c369, %c0_24] : memref<376x128xf32, #tpu.memory_space<vmem>>, vector<1x128xf32>
    %c192 = arith.constant 192 : index
    %c0_25 = arith.constant 0 : index
    %52 = vector.load %arg4[%c192, %c0_25] : memref<376x128xf32, #tpu.memory_space<vmem>>, vector<16x128xf32>
    %c208 = arith.constant 208 : index
    %c0_26 = arith.constant 0 : index
    %53 = vector.load %arg4[%c208, %c0_26] : memref<376x128xf32, #tpu.memory_space<vmem>>, vector<64x128xf32>
    %c272 = arith.constant 272 : index
    %c0_27 = arith.constant 0 : index
    %54 = vector.load %arg4[%c272, %c0_27] : memref<376x128xf32, #tpu.memory_space<vmem>>, vector<32x128xf32>
    %cst_28 = arith.constant dense<0.000000e+00> : vector<8x128xf32>
    %55 = tpu.matmul %11, %52, %cst_28 {dimension_numbers = #tpu.dot_dimension_numbers<[1], [0], [0], [1], [0, 0, 1, 1], [], []>} : vector<8x16xf32>, vector<16x128xf32>, vector<8x128xf32> -> vector<8x128xf32>
    %cst_29 = arith.constant dense<0.000000e+00> : vector<8x128xf32>
    %56 = tpu.matmul %46, %53, %cst_29 {dimension_numbers = #tpu.dot_dimension_numbers<[1], [0], [0], [1], [0, 0, 1, 1], [], []>} : vector<8x64xf32>, vector<64x128xf32>, vector<8x128xf32> -> vector<8x128xf32>
    %57 = arith.addf %55, %56 : vector<8x128xf32>
    %cst_30 = arith.constant dense<0.000000e+00> : vector<8x128xf32>
    %58 = tpu.matmul %48, %54, %cst_30 {dimension_numbers = #tpu.dot_dimension_numbers<[1], [0], [0], [1], [0, 0, 1, 1], [], []>} : vector<8x32xf32>, vector<32x128xf32>, vector<8x128xf32> -> vector<8x128xf32>
    %59 = arith.addf %57, %58 : vector<8x128xf32>
    %60 = vector.broadcast %51 : vector<1x128xf32> to vector<8x128xf32>
    %61 = arith.addf %59, %60 : vector<8x128xf32>
    %62 = arith.negf %61 : vector<8x128xf32>
    %63 = math.exp %62 : vector<8x128xf32>
    %cst_31 = arith.constant 1.000000e+00 : f32
    %64 = vector.broadcast %cst_31 : f32 to vector<8x128xf32>
    %65 = arith.addf %64, %63 : vector<8x128xf32>
    %66 = arith.divf %64, %65 : vector<8x128xf32>
    %67 = math.tanh %61 : vector<8x128xf32>
    %68 = vector.extract_strided_slice %66 {offsets = [0, 0], sizes = [8, 32], strides = [1, 1]} : vector<8x128xf32> to vector<8x32xf32>
    %69 = vector.extract_strided_slice %66 {offsets = [0, 32], sizes = [8, 32], strides = [1, 1]} : vector<8x128xf32> to vector<8x32xf32>
    %70 = vector.extract_strided_slice %67 {offsets = [0, 64], sizes = [8, 32], strides = [1, 1]} : vector<8x128xf32> to vector<8x32xf32>
    %71 = vector.extract_strided_slice %66 {offsets = [0, 96], sizes = [8, 32], strides = [1, 1]} : vector<8x128xf32> to vector<8x32xf32>
    %72 = arith.mulf %69, %50 : vector<8x32xf32>
    %73 = arith.mulf %68, %70 : vector<8x32xf32>
    %74 = arith.addf %72, %73 : vector<8x32xf32>
    %75 = math.tanh %74 : vector<8x32xf32>
    %76 = arith.mulf %71, %75 : vector<8x32xf32>
    %c0_32 = arith.constant 0 : index
    %c0_33 = arith.constant 0 : index
    %c0_34 = arith.constant 0 : index
    %77 = vector.load %arg7[%c0_32, %c0_33, %c0_34] : memref<2x8x32xf32, #tpu.memory_space<vmem>>, vector<1x8x32xf32>
    %78 = vector.shape_cast %77 : vector<1x8x32xf32> to vector<8x32xf32>
    %79 = vector.shape_cast %76 : vector<8x32xf32> to vector<1x8x32xf32>
    tpu.vector_store %arg7[%c0_32, %c0_33, %c0_34], %79 {strides = array<i32>} : memref<2x8x32xf32, #tpu.memory_space<vmem>>, vector<1x8x32xf32>,
    %c0_35 = arith.constant 0 : index
    %c0_36 = arith.constant 0 : index
    %c0_37 = arith.constant 0 : index
    %80 = vector.load %arg8[%c0_35, %c0_36, %c0_37] : memref<2x8x32xf32, #tpu.memory_space<vmem>>, vector<1x8x32xf32>
    %81 = vector.shape_cast %80 : vector<1x8x32xf32> to vector<8x32xf32>
    %82 = vector.shape_cast %74 : vector<8x32xf32> to vector<1x8x32xf32>
    tpu.vector_store %arg8[%c0_35, %c0_36, %c0_37], %82 {strides = array<i32>} : memref<2x8x32xf32, #tpu.memory_space<vmem>>, vector<1x8x32xf32>,
    %83 = vector.extract_strided_slice %0 {offsets = [1, 0, 0], sizes = [1, 8, 32], strides = [1, 1, 1]} : vector<2x8x32xf32> to vector<1x8x32xf32>
    %84 = vector.shape_cast %83 : vector<1x8x32xf32> to vector<8x32xf32>
    %85 = vector.extract_strided_slice %1 {offsets = [1, 0, 0], sizes = [1, 8, 32], strides = [1, 1, 1]} : vector<2x8x32xf32> to vector<1x8x32xf32>
    %86 = vector.shape_cast %85 : vector<1x8x32xf32> to vector<8x32xf32>
    %c370 = arith.constant 370 : index
    %c0_38 = arith.constant 0 : index
    %87 = vector.load %arg4[%c370, %c0_38] : memref<376x128xf32, #tpu.memory_space<vmem>>, vector<1x128xf32>
    %c304 = arith.constant 304 : index
    %c0_39 = arith.constant 0 : index
    %88 = vector.load %arg4[%c304, %c0_39] : memref<376x128xf32, #tpu.memory_space<vmem>>, vector<32x128xf32>
    %c336 = arith.constant 336 : index
    %c0_40 = arith.constant 0 : index
    %89 = vector.load %arg4[%c336, %c0_40] : memref<376x128xf32, #tpu.memory_space<vmem>>, vector<32x128xf32>
    %cst_41 = arith.constant dense<0.000000e+00> : vector<8x128xf32>
    %90 = tpu.matmul %76, %88, %cst_41 {dimension_numbers = #tpu.dot_dimension_numbers<[1], [0], [0], [1], [0, 0, 1, 1], [], []>} : vector<8x32xf32>, vector<32x128xf32>, vector<8x128xf32> -> vector<8x128xf32>
    %cst_42 = arith.constant dense<0.000000e+00> : vector<8x128xf32>
    %91 = tpu.matmul %84, %89, %cst_42 {dimension_numbers = #tpu.dot_dimension_numbers<[1], [0], [0], [1], [0, 0, 1, 1], [], []>} : vector<8x32xf32>, vector<32x128xf32>, vector<8x128xf32> -> vector<8x128xf32>
    %92 = arith.addf %90, %91 : vector<8x128xf32>
    %93 = vector.broadcast %87 : vector<1x128xf32> to vector<8x128xf32>
    %94 = arith.addf %92, %93 : vector<8x128xf32>
    %95 = arith.negf %94 : vector<8x128xf32>
    %96 = math.exp %95 : vector<8x128xf32>
    %cst_43 = arith.constant 1.000000e+00 : f32
    %97 = vector.broadcast %cst_43 : f32 to vector<8x128xf32>
    %98 = arith.addf %97, %96 : vector<8x128xf32>
    %99 = arith.divf %97, %98 : vector<8x128xf32>
    %100 = math.tanh %94 : vector<8x128xf32>
    %101 = vector.extract_strided_slice %99 {offsets = [0, 0], sizes = [8, 32], strides = [1, 1]} : vector<8x128xf32> to vector<8x32xf32>
    %102 = vector.extract_strided_slice %99 {offsets = [0, 32], sizes = [8, 32], strides = [1, 1]} : vector<8x128xf32> to vector<8x32xf32>
    %103 = vector.extract_strided_slice %100 {offsets = [0, 64], sizes = [8, 32], strides = [1, 1]} : vector<8x128xf32> to vector<8x32xf32>
    %104 = vector.extract_strided_slice %99 {offsets = [0, 96], sizes = [8, 32], strides = [1, 1]} : vector<8x128xf32> to vector<8x32xf32>
    %105 = arith.mulf %102, %86 : vector<8x32xf32>
    %106 = arith.mulf %101, %103 : vector<8x32xf32>
    %107 = arith.addf %105, %106 : vector<8x32xf32>
    %108 = math.tanh %107 : vector<8x32xf32>
    %109 = arith.mulf %104, %108 : vector<8x32xf32>
    %c1 = arith.constant 1 : index
    %c0_44 = arith.constant 0 : index
    %c0_45 = arith.constant 0 : index
    %110 = vector.load %arg7[%c1, %c0_44, %c0_45] : memref<2x8x32xf32, #tpu.memory_space<vmem>>, vector<1x8x32xf32>
    %111 = vector.shape_cast %110 : vector<1x8x32xf32> to vector<8x32xf32>
    %112 = vector.shape_cast %109 : vector<8x32xf32> to vector<1x8x32xf32>
    tpu.vector_store %arg7[%c1, %c0_44, %c0_45], %112 {strides = array<i32>} : memref<2x8x32xf32, #tpu.memory_space<vmem>>, vector<1x8x32xf32>,
    %c1_46 = arith.constant 1 : index
    %c0_47 = arith.constant 0 : index
    %c0_48 = arith.constant 0 : index
    %113 = vector.load %arg8[%c1_46, %c0_47, %c0_48] : memref<2x8x32xf32, #tpu.memory_space<vmem>>, vector<1x8x32xf32>
    %114 = vector.shape_cast %113 : vector<1x8x32xf32> to vector<8x32xf32>
    %115 = vector.shape_cast %107 : vector<8x32xf32> to vector<1x8x32xf32>
    tpu.vector_store %arg8[%c1_46, %c0_47, %c0_48], %115 {strides = array<i32>} : memref<2x8x32xf32, #tpu.memory_space<vmem>>, vector<1x8x32xf32>,
    %c0_49 = arith.constant 0 : index
    %c0_50 = arith.constant 0 : index
    %116 = vector.load %arg5[%c0_49, %c0_50] : memref<120x128xf32, #tpu.memory_space<vmem>>, vector<32x128xf32>
    %c32 = arith.constant 32 : index
    %c0_51 = arith.constant 0 : index
    %117 = vector.load %arg5[%c32, %c0_51] : memref<120x128xf32, #tpu.memory_space<vmem>>, vector<64x128xf32>
    %c96_52 = arith.constant 96 : index
    %c0_53 = arith.constant 0 : index
    %118 = vector.load %arg5[%c96_52, %c0_53] : memref<120x128xf32, #tpu.memory_space<vmem>>, vector<16x128xf32>
    %c112 = arith.constant 112 : index
    %c0_54 = arith.constant 0 : index
    %119 = vector.load %arg5[%c112, %c0_54] : memref<120x128xf32, #tpu.memory_space<vmem>>, vector<1x128xf32>
    %cst_55 = arith.constant dense<0.000000e+00> : vector<8x128xf32>
    %120 = tpu.matmul %109, %116, %cst_55 {dimension_numbers = #tpu.dot_dimension_numbers<[1], [0], [0], [1], [0, 0, 1, 1], [], []>} : vector<8x32xf32>, vector<32x128xf32>, vector<8x128xf32> -> vector<8x128xf32>
    %cst_56 = arith.constant dense<0.000000e+00> : vector<8x128xf32>
    %121 = tpu.matmul %46, %117, %cst_56 {dimension_numbers = #tpu.dot_dimension_numbers<[1], [0], [0], [1], [0, 0, 1, 1], [], []>} : vector<8x64xf32>, vector<64x128xf32>, vector<8x128xf32> -> vector<8x128xf32>
    %122 = arith.addf %120, %121 : vector<8x128xf32>
    %cst_57 = arith.constant dense<0.000000e+00> : vector<8x128xf32>
    %123 = tpu.matmul %11, %118, %cst_57 {dimension_numbers = #tpu.dot_dimension_numbers<[1], [0], [0], [1], [0, 0, 1, 1], [], []>} : vector<8x16xf32>, vector<16x128xf32>, vector<8x128xf32> -> vector<8x128xf32>
    %124 = arith.addf %122, %123 : vector<8x128xf32>
    %125 = vector.broadcast %119 : vector<1x128xf32> to vector<8x128xf32>
    %126 = arith.addf %124, %125 : vector<8x128xf32>
    %c0_58 = arith.constant 0 : index
    %c0_59 = arith.constant 0 : index
    %127 = vector.load %arg6[%c0_58, %c0_59] : memref<8x128xf32, #tpu.memory_space<vmem>>, vector<8x128xf32>
    tpu.vector_store %arg6[%c0_58, %c0_59], %126 {strides = array<i32>} : memref<8x128xf32, #tpu.memory_space<vmem>>, vector<8x128xf32>,
    return
  }
}

</mosaic_0001>

<bundles_post_ra>
// kernel: decoder_lstm_forward.1
= control target key start
LH: loop header
LB: loop body
LE: loop exit
PB: predicated region body
PF: predicated region fallthrough
CT: control target
= control target key end

     0   :  { %14 = vsyncpa [#allocation3], 0  ;;  %s1213_s0 = inlined_call_operand.vmem [shape: s32[8,1], index: 0, kind: input, shape index: {}]   ;;  %s1214_s1 = inlined_call_operand.vmem [shape: f32[2,8,32], index: 1, kind: input, shape index: {}, may-alias: {1,7}]   ;;  %s1215_s2 = inlined_call_operand.vmem [shape: f32[2,8,32], index: 2, kind: input, shape index: {}, may-alias: {2,8}]   ;;  %s1216_s3 = inlined_call_operand.hbm [shape: f32[8,8,64], index: 3, kind: input, shape index: {}]   ;;  %s1217_s4 = inlined_call_operand.hbm [shape: f32[376,128], index: 4, kind: input, shape index: {}]   ;;  %s1218_s5 = inlined_call_operand.hbm [shape: f32[120,128], index: 5, kind: input, shape index: {}]   ;;  %s1219_s6 = inlined_call_operand.hbm [shape: f32[8,128], index: 6, kind: output, shape index: {0}]   ;;  %s1220_s7 = inlined_call_operand.vmem [shape: f32[2,8,32], index: 7, kind: output, shape index: {1}, may-alias: {1,7}]   ;;  %s1221_s8 = inlined_call_operand.vmem [shape: f32[2,8,32], index: 8, kind: output, shape index: {2}, may-alias: {2,8}]  }
   0x1   :  { %15 = vsyncpa [#allocation6], 0 }
   0x2   :  { %16 = vsyncpa [#allocation4], 0  ;;  %s40_s29 = sshll.u32 %s1217_s4, 4  ;;  %s1014_s30 = smov [#allocation5]   ;;  %s41_s29 = int_to_ptr.hbm [resolvable:$true] %s40_s29 }
   0x3   :  { %s42_s9 = sshll.u32 %s1014_s30, 4  ;;  %s27_s12 = sshll.u32 %s1216_s3, 4  ;;  %s43_s9 = int_to_ptr.vmem [resolvable:$true] %s42_s9  ;;  %s28_s12 = int_to_ptr.hbm [resolvable:$true] %s27_s12 }
   0x4   :  { %s1015_s13 = smov 128   ;;  %s1016_s14 = smov 8  }
   0x5   :  { %48 = dma.hbm_to_vmem [thread:$0]  %s41_s29, 6016, %s43_s9, [#allocation6], %s1015_s13, %s1015_s13, %s1016_s14  }
   0x6   :  { %s1017_s15 = smov [#allocation2]   ;;  %s53_s19 = sshll.u32 %s1218_s5, 4  ;;  %s54_s19 = int_to_ptr.hbm [resolvable:$true] %s53_s19 }
   0x7   :  { %s29_s16 = sshll.u32 %s1017_s15, 4  ;;  %s1018_s4 = smov [#allocation7]   ;;  %s30_s16 = int_to_ptr.vmem [resolvable:$true] %s29_s16 }
   0x8   :  { %35 = dma.hbm_to_vmem [thread:$0]  %s28_s12, 1024, %s30_s16, [#allocation3], %s1015_s13, %s1015_s13, %s1016_s14  }
   0x9   :  { %s55_s20 = sshll.u32 %s1018_s4, 4  ;;  %s56_s20 = int_to_ptr.vmem [resolvable:$true] %s55_s20 }
   0xa   :  { %61 = dma.hbm_to_vmem [thread:$0]  %s54_s19, 1920, %s56_s20, [#allocation6], %s1015_s13, %s1015_s13, %s1016_s14  }
   0xb   :  { %1008 = dma.done.wait [#allocation3], 1024  }
   0xc   :  { %1009 = vsyncadd [#allocation3], 4294966272 }
   0xd   :  { %1010 = dma.done.wait [#allocation6], 7936  }
   0xe   :  { %1011 = vsyncadd [#allocation6], 4294959360  ;;  %v129_v0 = vld [vmem:[#allocation5 + $0x98] sm:$0xff]  ;;  %v128_v1 = vld [vmem:[#allocation5 + $0x90] sm:$0xff]  ;;  %vm143_vm0 = vcmask 261120   ;;  %vm94_vm1 = vcmask 523264  }
   0xf   :  { %199 = vmatpush.msra.mxu2 %v129_v0  ;;  %v127_v2 = vld [vmem:[#allocation5 + $0x88] sm:$0xff]  ;;  %v121_v3 = vld [vmem:[#allocation5 + $0x58] sm:$0xff]  ;;  %v120_v4 = vld [vmem:[#allocation5 + $0x50] sm:$0xff]  ;;  %v1019_v47 = vmov 0   ;;  %vm322_vm2 = vcmask 7168   ;;  %vm500_vm8 = vcmask 130048  }
  0x10   :  { %159 = vmatpush.msra.mxu1 %v121_v3  ;;  %v126_v5 = vld [vmem:[#allocation5 + $0x80] sm:$0xff]  ;;  %v119_v6 = vld [vmem:[#allocation5 + $0x48] sm:$0xff]  ;;  %v125_v7 = vld [vmem:[#allocation5 + $0x78] sm:$0xff]  ;;  %855 = vset.pattern.permute.xlu0 %v1019_v47  ;;  %s1022_s26 = smov 64   ;;  %s795_s18 = sshll.u32 %s1219_s6, 4  ;;  %s796_s18 = int_to_ptr.hbm [resolvable:$true] %s795_s18 }
  0x11   :  { %200 = vmatpush.msra.mxu2 %v128_v1  ;;  %v118_v8 = vld [vmem:[#allocation5 + $0x40] sm:$0xff]  ;;  %v1082_v9 = vld [vmem:[%s1214_s1 + $0x8] sm:$0xff]  ;;  %v124_v10 = vld [vmem:[#allocation5 + $0x70] sm:$0xff]  ;;  %857 = vset.pattern.permute.xlu2 %v1019_v47 }
  0x12   :  { %160 = vmatpush.msra.mxu1 %v120_v4  ;;  %v123_v11 = vld [vmem:[#allocation5 + $0x68] sm:$0xff]  ;;  %v122_v12 = vld [vmem:[#allocation5 + $0x60] sm:$0xff]  ;;  %v1094_v15 = vld [vmem:[#allocation2 + $0x10] sm:$0xff]  ;;  %856 = vset.pattern.permute.xlu1 %v1019_v47 }
  0x13   :  { %201 = vmatpush.msra.mxu2 %v127_v2  ;;  %v1086_v13 = vld [vmem:[#allocation2] sm:$0xff]  ;;  %v1090_v14 = vld [vmem:[#allocation2 + $0x8] sm:$0xff]  ;;  %v1098_v16 = vld [vmem:[#allocation2 + $0x18] sm:$0xff] }
  0x14   :  { %161 = vmatpush.msra.mxu1 %v119_v6  ;;  %v1102_v17 = vld [vmem:[#allocation2 + $0x20] sm:$0xff]  ;;  %v1106_v18 = vld [vmem:[#allocation2 + $0x28] sm:$0xff]  ;;  %v1110_v19 = vld [vmem:[#allocation2 + $0x30] sm:$0xff] }
  0x15   :  { %202 = vmatpush.msra.mxu2 %v126_v5  ;;  %v1114_v20 = vld [vmem:[#allocation2 + $0x38] sm:$0xff]  ;;  %v133_v22 = vld [vmem:[#allocation5 + $0xb0] sm:$0xff]  ;;  %v132_v23 = vld [vmem:[#allocation5 + $0xa8] sm:$0xff] }
  0x16   :  { %162 = vmatpush.msra.mxu1 %v118_v8  ;;  %v134_v21 = vld [vmem:[#allocation5 + $0xb8] sm:$0xff]  ;;  %v131_v24 = vld [vmem:[#allocation5 + $0xa0] sm:$0xff]  ;;  %v858_v26 = vld [vmem:[#allocation5 + $0x170] ss:$0 sm:$0xff] }
  0x17   :  { %203 = vmatpush.msra.mxu2 %v125_v7  ;;  %815 = vmatmul.msk.f32.vlgmr.msra.gmra.mxu1 %vm143_vm0, %v1082_v9  ;;  %v78_v46 = vld [vmem:[%s1213_s0] sm:$0xff]  ;;  %v93_v3 = vld [vmem:[#allocation5 + $0x38] sm:$0xff]  ;;  %v92_v4 = vld [vmem:[#allocation5 + $0x30] sm:$0xff] }
  0x18   :  { %293 = vmatpush.msra.mxu3 %v134_v21  ;;  %82 = vperm.xlu0 %855, %v78_v46   ;;  %v91_v5 = vld [vmem:[#allocation5 + $0x28] sm:$0xff]  ;;  %v90_v6 = vld [vmem:[#allocation5 + $0x20] sm:$0xff]  ;;  %v89_v8 = vld [vmem:[#allocation5 + $0x18] sm:$0xff] }
  0x19   :  { %204 = vmatpush.msra.mxu2 %v124_v10  ;;  %106 = vmatpush.msra.mxu0 %v93_v3 }
  0x1a   :  { %294 = vmatpush.msra.mxu3 %v133_v22 }
  0x1b   :  { %205 = vmatpush.msra.mxu2 %v123_v11  ;;  %107 = vmatpush.msra.mxu0 %v92_v4  ;;  %v86_v4 = vld [vmem:[#allocation5] sm:$0xff] }
  0x1c   :  { %295 = vmatpush.msra.mxu3 %v132_v23 }
  0x1d   :  { %206 = vmatpush.msra.mxu2 %v122_v12  ;;  %108 = vmatpush.msra.mxu0 %v91_v5 }
  0x1e   :  { %816 = vmatmul.msk.f32.vlgmr.msra.gmra.mxu2 %vm94_vm1, %v1086_v13  ;;  %296 = vmatpush.msra.mxu3 %v131_v24 }
  0x1f   :  { %109 = vmatpush.msra.mxu0 %v90_v6 }
  0x21   :  { %110 = vmatpush.msra.mxu0 %v89_v8 }
  0x26   :  { %817 = vmatmul.msk.f32.gmra.mxu2 %vm94_vm1, %v1090_v14 }
  0x2e   :  { %818 = vmatmul.msk.f32.gmra.mxu2 %vm94_vm1, %v1094_v15 }
  0x36   :  { %819 = vmatmul.msk.f32.gmra.mxu2 %vm94_vm1, %v1098_v16 }
  0x3e   :  { %820 = vmatmul.msk.f32.gmra.mxu2 %vm94_vm1, %v1102_v17 }
  0x46   :  { %821 = vmatmul.msk.f32.gmra.mxu2 %vm94_vm1, %v1106_v18 }
  0x4e   :  { %822 = vmatmul.msk.f32.gmra.mxu2 %vm94_vm1, %v1110_v19 }
  0x56   :  { %823 = vmatmul.msk.f32.gmra.mxu2 %vm94_vm1, %v1114_v20 }
  0x94   :  { %v164_v25 = vpop.f32.mrf.mxu1 }
  0xa1   :  { %v208_v27 = vpop.f32.mrf.mxu2 }
  0xa2   :  { %v232_v28 = vadd.f32 %v208_v27, %v164_v25 }
  0xa4   :  { %v241_v29 = vadd.f32 %v858_v26, %v232_v28 }
  0xa6   :  { %862 = vtanh.f32 %v241_v29 }
  0xa9   :  { %v211_v30 = vpop.f32.mrf.mxu2 }
  0xaa   :  { %v233_v31 = vadd.f32 %v211_v30, %v164_v25 }
  0xac   :  { %v863_v32 = vpop.eup %862  ;;  %v242_v33 = vadd.f32 %v858_v26, %v233_v31 }
  0xad   :  { %824 = vmatmul.msk.f32.vlgmr.msra.gmra.mxu3 %vm143_vm0, %v863_v32 }
  0xae   :  { %864 = vtanh.f32 %v242_v33 }
  0xb1   :  { %v214_v34 = vpop.f32.mrf.mxu2 }
  0xb2   :  { %v234_v35 = vadd.f32 %v214_v34, %v164_v25 }
  0xb4   :  { %v865_v36 = vpop.eup %864  ;;  %v243_v37 = vadd.f32 %v858_v26, %v234_v35 }
  0xb5   :  { %825 = vmatmul.msk.f32.gmra.mxu3 %vm143_vm0, %v865_v36 }
  0xb6   :  { %866 = vtanh.f32 %v243_v37 }
  0xb9   :  { %v217_v38 = vpop.f32.mrf.mxu2 }
  0xba   :  { %v235_v39 = vadd.f32 %v217_v38, %v164_v25 }
  0xbc   :  { %v867_v40 = vpop.eup %866  ;;  %v244_v41 = vadd.f32 %v858_v26, %v235_v39 }
  0xbd   :  { %826 = vmatmul.msk.f32.gmra.mxu3 %vm143_vm0, %v867_v40 }
  0xbe   :  { %868 = vtanh.f32 %v244_v41 }
  0xc1   :  { %v220_v42 = vpop.f32.mrf.mxu2 }
  0xc2   :  { %v236_v43 = vadd.f32 %v220_v42, %v164_v25 }
  0xc4   :  { %v869_v44 = vpop.eup %868  ;;  %v245_v45 = vadd.f32 %v858_v26, %v236_v43 }
  0xc5   :  { %827 = vmatmul.msk.f32.gmra.mxu3 %vm143_vm0, %v869_v44 }
  0xc6   :  { %870 = vtanh.f32 %v245_v45 }
  0xc9   :  { %v223_v48 = vpop.f32.mrf.mxu2 }
  0xca   :  { %v237_v49 = vadd.f32 %v223_v48, %v164_v25 }
  0xcc   :  { %v871_v50 = vpop.eup %870  ;;  %v246_v51 = vadd.f32 %v858_v26, %v237_v49 }
  0xcd   :  { %828 = vmatmul.msk.f32.gmra.mxu3 %vm143_vm0, %v871_v50 }
  0xce   :  { %872 = vtanh.f32 %v246_v51 }
  0xd1   :  { %v226_v52 = vpop.f32.mrf.mxu2 }
  0xd2   :  { %v238_v53 = vadd.f32 %v226_v52, %v164_v25 }
  0xd4   :  { %v873_v54 = vpop.eup %872  ;;  %v247_v55 = vadd.f32 %v858_v26, %v238_v53 }
  0xd5   :  { %829 = vmatmul.msk.f32.gmra.mxu3 %vm143_vm0, %v873_v54 }
  0xd6   :  { %874 = vtanh.f32 %v247_v55 }
  0xd9   :  { %v229_v56 = vpop.f32.mrf.mxu2 }
  0xda   :  { %v239_v57 = vadd.f32 %v229_v56, %v164_v25 }
  0xdc   :  { %v875_v58 = vpop.eup %874  ;;  %v248_v59 = vadd.f32 %v858_v26, %v239_v57 }
  0xdd   :  { %830 = vmatmul.msk.f32.gmra.mxu3 %vm143_vm0, %v875_v58 }
  0xde   :  { %876 = vtanh.f32 %v248_v59 }
  0xe4   :  { %v877_v60 = vpop.eup %876 }
  0xe5   :  { %831 = vmatmul.msk.f32.gmra.mxu3 %vm143_vm0, %v877_v60  ;;  %v88_v60 = vld [vmem:[#allocation5 + $0x10] sm:$0xff] }
  0xe6   :  { %111 = vmatpush.msra.mxu0 %v88_v60  ;;  %v474_v60 = vld [vmem:[#allocation5 + $0x118] sm:$0xff] }
 0x130   :  { %v298_v61 = vpop.f32.mrf.mxu3 }
 0x131   :  { %v323_v24 = vsel %vm322_vm2, %v298_v61, -inf }
 0x138   :  { %v301_v62 = vpop.f32.mrf.mxu3 }
 0x139   :  { %v324_v11 = vsel %vm322_vm2, %v301_v62, -inf }
 0x140   :  { %v304_v63 = vpop.f32.mrf.mxu3 }
 0x141   :  { %v325_v25 = vsel %vm322_vm2, %v304_v63, -inf }
 0x148   :  { %v307_v0 = vpop.f32.mrf.mxu3 }
 0x149   :  { %v326_v26 = vsel %vm322_vm2, %v307_v0, -inf }
 0x150   :  { %v310_v1 = vpop.f32.mrf.mxu3 }
 0x151   :  { %v327_v12 = vsel %vm322_vm2, %v310_v1, -inf }
 0x152   :  { %v328_v28 = vmax.f32 %v323_v24, %v327_v12 }
 0x158   :  { %v313_v2 = vpop.f32.mrf.mxu3 }
 0x159   :  { %v329_v10 = vsel %vm322_vm2, %v313_v2, -inf }
 0x15a   :  { %v330_v22 = vmax.f32 %v324_v11, %v329_v10  ;;  %v1020_v10 = vmov 0.0  }
 0x15c   :  { %v335_v31 = vmax.f32 %v328_v28, %v330_v22 }
 0x160   :  { %v316_v7 = vpop.f32.mrf.mxu3 }
 0x161   :  { %v331_v21 = vsel %vm322_vm2, %v316_v7, -inf }
 0x162   :  { %v332_v29 = vmax.f32 %v325_v25, %v331_v21 }
 0x168   :  { %v319_v23 = vpop.f32.mrf.mxu3 }
 0x169   :  { %v333_v27 = vsel %vm322_vm2, %v319_v23, -inf }
 0x16a   :  { %v334_v30 = vmax.f32 %v326_v26, %v333_v27 }
 0x16c   :  { %v336_v32 = vmax.f32 %v332_v29, %v334_v30 }
 0x16e   :  { %v337_v33 = vmax.f32 %v335_v31, %v336_v32 }
 0x170   :  { %v338_v34 = vsub.f32 %v298_v61, %v337_v33  ;;  %v339_v35 = vsub.f32 %v301_v62, %v337_v33  ;;  %v340_v36 = vsub.f32 %v304_v63, %v337_v33  ;;  %v341_v37 = vsub.f32 %v307_v0, %v337_v33  ;;  %v87_v61 = vld [vmem:[#allocation5 + $0x8] sm:$0xff]  ;;  %v83_v0 = vpop.permute.xlu0 %82 }
 0x171   :  { %v342_v38 = vsub.f32 %v310_v1, %v337_v33  ;;  %v343_v42 = vsub.f32 %v313_v2, %v337_v33  ;;  %v344_v44 = vsub.f32 %v316_v7, %v337_v33  ;;  %v345_v46 = vsub.f32 %v319_v23, %v337_v33  ;;  %112 = vmatpush.msra.mxu0 %v87_v61 }
 0x172   :  { %v346_v39 = vmul.f32 1.442695, %v338_v34  ;;  %v348_v40 = vmul.f32 1.442695, %v339_v35  ;;  %v350_v41 = vmul.f32 1.442695, %v340_v36  ;;  %v79_v62 = vlaneseq }
 0x173   :  { %v352_v43 = vmul.f32 1.442695, %v341_v37  ;;  %v354_v45 = vmul.f32 1.442695, %v342_v38  ;;  %v356_v47 = vmul.f32 1.442695, %v343_v42  ;;  %113 = vmatpush.msra.mxu0 %v86_v4 }
 0x174   :  { %878 = vpow2.f32 %v346_v39  ;;  %v358_v48 = vmul.f32 1.442695, %v344_v44  ;;  %v360_v51 = vmul.f32 1.442695, %v345_v46  ;;  %v80_v3 = vand.u32 127, %v79_v62  ;;  %v472_v44 = vld [vmem:[#allocation5 + $0x108] sm:$0xff] }
 0x175   :  { %880 = vpow2.f32 %v348_v40  ;;  %488 = vmatpush.msrb.mxu1 %v472_v44  ;;  %v470_v46 = vld [vmem:[#allocation5 + $0xf8] sm:$0xff]  ;;  %v606_v62 = vld [vmem:[#allocation5 + $0x150] sm:$0xff] }
 0x176   :  { %882 = vpow2.f32 %v350_v41  ;;  %vm84_vm3 = vcmp.eq.s32.totalorder %v83_v0, %v80_v3  ;;  %v74_v0 = vld [vmem:[%s1214_s1] sm:$0xff]  ;;  %s1021_s1 = smov 32  }
 0x177   :  { %884 = vpow2.f32 %v352_v43  ;;  %v85_v11 = vsel %vm84_vm3, 1.0, %v1020_v10  ;;  %v76_v10 = vld [vmem:[%s1215_s2] sm:$0xff] }
 0x178   :  { %886 = vpow2.f32 %v354_v45  ;;  %814 = vmatmul.msk.f32.vlgmr.msra.gmra.mxu0 %vm94_vm1, %v85_v11  ;;  %v471_v45 = vld [vmem:[#allocation5 + $0x100] sm:$0xff] }
 0x179   :  { %888 = vpow2.f32 %v356_v47  ;;  %489 = vmatpush.msrb.mxu1 %v471_v45  ;;  %v469_v47 = vld [vmem:[#allocation5 + $0xf0] sm:$0xff] }
 0x17a   :  { %v879_v49 = vpop.eup %878  ;;  %890 = vpow2.f32 %v358_v48  ;;  %v468_v48 = vld [vmem:[#allocation5 + $0xe8] sm:$0xff]  ;;  %v859_v45 = vld [vmem:[#allocation5 + $0x171] ss:$0 sm:$0xff] }
 0x17b   :  { %v881_v50 = vpop.eup %880  ;;  %v362_v52 = vsel %vm322_vm2, %v879_v49, 0.0  ;;  %892 = vpow2.f32 %v360_v51  ;;  %490 = vmatpush.msrb.mxu1 %v470_v46  ;;  %v463_v51 = vld [vmem:[#allocation5 + $0xc0] sm:$0xff] }
 0x17c   :  { %v883_v53 = vpop.eup %882  ;;  %v363_v54 = vsel %vm322_vm2, %v881_v50, 0.0 }
 0x17d   :  { %v885_v55 = vpop.eup %884  ;;  %v364_v56 = vadd.f32 %v363_v54, %v362_v52  ;;  %v365_v57 = vsel %vm322_vm2, %v883_v53, 0.0  ;;  %491 = vmatpush.msrb.mxu1 %v469_v47  ;;  %v466_v52 = vld [vmem:[#allocation5 + $0xd8] sm:$0xff] }
 0x17e   :  { %v887_v58 = vpop.eup %886  ;;  %v367_v63 = vsel %vm322_vm2, %v885_v55, 0.0 }
 0x17f   :  { %v366_v59 = vadd.f32 %v365_v57, %v364_v56  ;;  %v889_v1 = vpop.eup %888  ;;  %v369_v5 = vsel %vm322_vm2, %v887_v58, 0.0  ;;  %492 = vmatpush.msrb.mxu1 %v468_v48  ;;  %v609_v56 = vld [vmem:[#allocation5 + $0x168] sm:$0xff]  ;;  %v475_v57 = vld [vmem:[#allocation5 + $0x120] sm:$0xff] }
 0x180   :  { %v891_v6 = vpop.eup %890  ;;  %v371_v8 = vsel %vm322_vm2, %v889_v1, 0.0 }
 0x181   :  { %v368_v2 = vadd.f32 %v367_v63, %v366_v59  ;;  %v893_v12 = vpop.eup %892  ;;  %v373_v22 = vsel %vm322_vm2, %v891_v6, 0.0  ;;  %v607_v59 = vld [vmem:[#allocation5 + $0x158] sm:$0xff]  ;;  %v473_v63 = vld [vmem:[#allocation5 + $0x110] sm:$0xff] }
 0x182   :  { %v375_v24 = vsel %vm322_vm2, %v893_v12, 0.0 }
 0x183   :  { %v370_v7 = vadd.f32 %v369_v5, %v368_v2 }
 0x185   :  { %v372_v21 = vadd.f32 %v371_v8, %v370_v7 }
 0x187   :  { %v374_v23 = vadd.f32 %v373_v22, %v372_v21 }
 0x189   :  { %v376_v25 = vadd.f32 %v375_v24, %v374_v23 }
 0x18b   :  { %894 = vrcp.f32 %v376_v25  ;;  %v388_v29 = vand.u32 2147483648, %v376_v25  ;;  %v386_v31 = vand.u32 2147483647, %v376_v25  ;;  %vm382_vm5 = vweird.f32 %v376_v25 }
 0x18d   :  { %v389_v33 = vor.u32 1.1754944e-38, %v388_v29  ;;  %vm387_vm7 = vcmp.eq.f32.partialorder %v386_v31, 8.507059e+37 }
 0x191   :  { %v895_v26 = vpop.eup %894 }
 0x192   :  { %v378_v27 = vmul.f32 %v895_v26, %v376_v25  ;;  %vm383_vm4 = vweird.f32 %v895_v26 }
 0x193   :  { %vm384_vm6 = vmor %vm382_vm5, %vm383_vm4 }
 0x194   :  { %v379_v28 = vsub.f32 1.0, %v378_v27 }
 0x196   :  { %v380_v30 = vmul.f32 %v895_v26, %v379_v28 }
 0x198   :  { %v381_v32 = vadd.f32 %v895_v26, %v380_v30 }
 0x19a   :  { %v385_v34 = vsel %vm384_vm6, %v895_v26, %v381_v32 }
 0x19b   :  { %v390_v35 = vsel %vm387_vm7, %v389_v33, %v385_v34 }
 0x19c   :  { %v394_v36 = vmul.f32 %v885_v55, %v390_v35  ;;  %v392_v37 = vmul.f32 %v881_v50, %v390_v35  ;;  %v391_v38 = vmul.f32 %v879_v49, %v390_v35  ;;  %v395_v39 = vmul.f32 %v887_v58, %v390_v35  ;;  %v467_v49 = vld [vmem:[#allocation5 + $0xe0] sm:$0xff]  ;;  %v464_v50 = vld [vmem:[#allocation5 + $0xc8] sm:$0xff] }
 0x19d   :  { %v393_v40 = vmul.f32 %v883_v53, %v390_v35  ;;  %v396_v41 = vmul.f32 %v889_v1, %v390_v35  ;;  %v398_v42 = vmul.f32 %v893_v12, %v390_v35  ;;  %v397_v43 = vmul.f32 %v891_v6, %v390_v35  ;;  %493 = vmatpush.msrb.mxu1 %v467_v49  ;;  %v465_v53 = vld [vmem:[#allocation5 + $0xd0] sm:$0xff]  ;;  %v476_v55 = vld [vmem:[#allocation5 + $0x128] sm:$0xff]  ;;  %v608_v58 = vld [vmem:[#allocation5 + $0x160] sm:$0xff] }
 0x19e   :  { %416 = vperm.xlu2 %857, %v394_v36   ;;  %406 = vperm.xlu1 %856, %v392_v37   ;;  %v717_v36 = vld [vmem:[#allocation7 + $0x50] sm:$0xff]  ;;  %v716_v37 = vld [vmem:[#allocation7 + $0x48] sm:$0xff] }
 0x19f   :  { %401 = vperm.xlu0 %855, %v391_v38   ;;  %518 = vmatpush.msrb.mxu0 %v464_v50  ;;  %v715_v38 = vld [vmem:[#allocation7 + $0x40] sm:$0xff] }
 0x1a0   :  { %494 = vmatpush.msrb.mxu1 %v466_v52 }
 0x1a1   :  { %519 = vmatpush.msrb.mxu0 %v463_v51 }
 0x1a2   :  { %495 = vmatpush.msrb.mxu1 %v465_v53 }
 0x1a3   :  { %539 = vmatpush.msra.mxu0 %v476_v55 }
 0x1a4   :  { %622 = vmatpush.msra.mxu1 %v609_v56 }
 0x1a5   :  { %540 = vmatpush.msra.mxu0 %v475_v57 }
 0x1a6   :  { %421 = vperm.xlu2 %857, %v395_v39   ;;  %411 = vperm.xlu1 %856, %v393_v40   ;;  %v712_v39 = vld [vmem:[#allocation7 + $0x28] sm:$0xff]  ;;  %v711_v40 = vld [vmem:[#allocation7 + $0x20] sm:$0xff] }
 0x1a7   :  { %426 = vperm.xlu0 %855, %v396_v41   ;;  %623 = vmatpush.msra.mxu1 %v608_v58 }
 0x1a8   :  { %541 = vmatpush.msra.mxu0 %v474_v60 }
 0x1a9   :  { %624 = vmatpush.msra.mxu1 %v607_v59 }
 0x1aa   :  { %542 = vmatpush.msra.mxu0 %v473_v63 }
 0x1ab   :  { %625 = vmatpush.msra.mxu1 %v606_v62 }
 0x1ae   :  { %436 = vperm.xlu2 %857, %v398_v42   ;;  %431 = vperm.xlu1 %856, %v397_v43  }
 0x1b6   :  { %571 = vrot.lane.b32.xlu1 %v76_v10, %s1021_s1 }
 0x1f5   :  { %v1146_v54 = vpop.f32.mrf.mxu0 }
 0x1f6   :  { %833 = vmatmul.msk.f32.vlgmr.msrb.gmra.mxu0 %vm500_vm8, %v1146_v54 }
 0x1f8   :  { %v417_v61 = vpop.permute.xlu2 %416 }
 0x1f9   :  { %v442_v11 = vmul.f32 %v417_v61, %v1098_v16 }
 0x1fb   :  { %v452_v24 = vsel %vm94_vm1, %v442_v11, 0.0 }
 0x1fe   :  { %834 = vmatmul.msk.f32.vlgmr.msra.gmra.mxu0 %vm143_vm0, %v74_v0 }
 0x200   :  { %v422_v5 = vpop.permute.xlu2 %421 }
 0x208   :  { %v437_v26 = vpop.permute.xlu2 %436 }
 0x209   :  { %v446_v29 = vmul.f32 %v437_v26, %v1114_v20  ;;  %v714_v20 = vld [vmem:[#allocation7 + $0x38] sm:$0xff] }
 0x20b   :  { %v460_v34 = vsel %vm94_vm1, %v446_v29, 0.0 }
 0x210   :  { %v407_v1 = vpop.permute.xlu1 %406 }
 0x211   :  { %v402_v2 = vpop.permute.xlu0 %401  ;;  %v440_v3 = vmul.f32 %v407_v1, %v1090_v14 }
 0x212   :  { %v439_v4 = vmul.f32 %v402_v2, %v1086_v13  ;;  %v443_v13 = vmul.f32 %v422_v5, %v1102_v17  ;;  %v605_v5 = vld [vmem:[#allocation5 + $0x148] sm:$0xff] }
 0x213   :  { %v448_v6 = vsel %vm94_vm1, %v440_v3, 0.0  ;;  %644 = vmatpush.msrb.mxu0 %v605_v5 }
 0x214   :  { %v447_v7 = vsel %vm94_vm1, %v439_v4, 0.0  ;;  %v454_v16 = vsel %vm94_vm1, %v443_v13, 0.0 }
 0x215   :  { %v449_v14 = vadd.f32 %v448_v6, %v447_v7  ;;  %v604_v6 = vld [vmem:[#allocation5 + $0x140] sm:$0xff]  ;;  %v603_v7 = vld [vmem:[#allocation5 + $0x138] sm:$0xff] }
 0x216   :  { %645 = vmatpush.msrb.mxu0 %v604_v6 }
 0x218   :  { %v412_v8 = vpop.permute.xlu1 %411  ;;  %646 = vmatpush.msrb.mxu0 %v603_v7 }
 0x219   :  { %v441_v12 = vmul.f32 %v412_v8, %v1094_v15  ;;  %v427_v21 = vpop.permute.xlu0 %426  ;;  %v602_v8 = vld [vmem:[#allocation5 + $0x130] sm:$0xff] }
 0x21a   :  { %v444_v25 = vmul.f32 %v427_v21, %v1106_v18  ;;  %v718_v18 = vld [vmem:[#allocation7 + $0x58] sm:$0xff]  ;;  %647 = vmatpush.msrb.mxu0 %v602_v8 }
 0x21b   :  { %v450_v22 = vsel %vm94_vm1, %v441_v12, 0.0  ;;  %v77_v12 = vld [vmem:[%s1215_s2 + $0x8] sm:$0xff]  ;;  %v860_v21 = vld [vmem:[#allocation5 + $0x172] ss:$0 sm:$0xff]  ;;  %s1023_s2 = smov 96  }
 0x21c   :  { %v451_v23 = vadd.f32 %v450_v22, %v449_v14  ;;  %v456_v30 = vsel %vm94_vm1, %v444_v25, 0.0 }
 0x21e   :  { %v453_v27 = vadd.f32 %v452_v24, %v451_v23 }
 0x220   :  { %v455_v28 = vadd.f32 %v454_v16, %v453_v27  ;;  %v432_v15 = vpop.permute.xlu1 %431 }
 0x221   :  { %v445_v31 = vmul.f32 %v432_v15, %v1110_v19  ;;  %v713_v19 = vld [vmem:[#allocation7 + $0x30] sm:$0xff] }
 0x222   :  { %v457_v17 = vadd.f32 %v456_v30, %v455_v28 }
 0x223   :  { %v458_v32 = vsel %vm94_vm1, %v445_v31, 0.0 }
 0x224   :  { %v459_v33 = vadd.f32 %v458_v32, %v457_v17 }
 0x226   :  { %v461_v35 = vadd.f32 %v460_v34, %v459_v33 }
 0x228   :  { %832 = vmatmul.msk.f32.vlgmr.msrb.gmra.mxu1 %vm94_vm1, %v461_v35  ;;  %v572_v0 = vpop.permute.xlu1 %571 }
 0x229   :  { %730 = vmatpush.msrb.mxu1 %v718_v18 }
 0x22b   :  { %731 = vmatpush.msrb.mxu1 %v717_v36 }
 0x22d   :  { %732 = vmatpush.msrb.mxu1 %v716_v37 }
 0x22f   :  { %733 = vmatpush.msrb.mxu1 %v715_v38 }
 0x230   :  { %836 = vmatmul.msk.f32.vlgmr.msra.gmra.mxu1 %vm143_vm0, %v1082_v9 }
 0x231   :  { %734 = vmatpush.msrb.mxu1 %v714_v20 }
 0x233   :  { %735 = vmatpush.msrb.mxu1 %v713_v19 }
 0x235   :  { %736 = vmatpush.msrb.mxu1 %v712_v39 }
 0x237   :  { %737 = vmatpush.msrb.mxu1 %v711_v40 }
 0x238   :  { %841 = vmatmul.msk.f32.vlgmr.msrb.gmra.mxu1 %vm94_vm1, %v461_v35 }
 0x273   :  { %v521_v41 = vpop.f32.mrf.mxu0 }
 0x27b   :  { %v544_v43 = vpop.f32.mrf.mxu0 }
 0x2a5   :  { %v497_v42 = vpop.f32.mrf.mxu1 }
 0x2a6   :  { %v522_v44 = vadd.f32 %v521_v41, %v497_v42  ;;  %v710_v41 = vld [vmem:[#allocation7 + $0x18] sm:$0xff]  ;;  %v709_v42 = vld [vmem:[#allocation7 + $0x10] sm:$0xff] }
 0x2a7   :  { %756 = vmatpush.msra.mxu0 %v710_v41 }
 0x2a8   :  { %v547_v46 = vadd.f32 %v544_v43, %v522_v44  ;;  %v708_v43 = vld [vmem:[#allocation7 + $0x8] sm:$0xff]  ;;  %v707_v44 = vld [vmem:[#allocation7] sm:$0xff] }
 0x2a9   :  { %757 = vmatpush.msra.mxu0 %v709_v42 }
 0x2aa   :  { %v549_v47 = vadd.f32 %v859_v45, %v547_v46 }
 0x2ab   :  { %758 = vmatpush.msra.mxu0 %v708_v43 }
 0x2ac   :  { %896 = vtanh.f32 %v549_v47  ;;  %v835_v9 = vmul.f32 -1.442695, %v549_v47 }
 0x2ad   :  { %v627_v13 = vpop.f32.mrf.mxu1  ;;  %759 = vmatpush.msra.mxu0 %v707_v44 }
 0x2ae   :  { %898 = vpow2.f32 %v835_v9  ;;  %v719_v9 = vld [vmem:[#allocation7 + $0x60] sm:$0xff] }
 0x2b2   :  { %v897_v48 = vpop.eup %896 }
 0x2b3   :  { %576 = vrot.lane.b32.xlu0 %v897_v48, %s1022_s26  ;;  %v720_v48 = vld [vmem:[#allocation7 + $0x68] sm:$0xff] }
 0x2b4   :  { %v899_v49 = vpop.eup %898 }
 0x2b5   :  { %v553_v50 = vadd.f32 1.0, %v899_v49 }
 0x2b7   :  { %900 = vrcp.f32 %v553_v50  ;;  %v565_v57 = vand.u32 2147483648, %v553_v50  ;;  %vm559_vm10 = vweird.f32 %v553_v50  ;;  %v563_v58 = vand.u32 2147483647, %v553_v50 }
 0x2b9   :  { %v566_v60 = vor.u32 1.1754944e-38, %v565_v57  ;;  %vm564_vm12 = vcmp.eq.f32.partialorder %v563_v58, 8.507059e+37 }
 0x2bd   :  { %v901_v51 = vpop.eup %900 }
 0x2be   :  { %v555_v52 = vmul.f32 %v901_v51, %v553_v50  ;;  %vm560_vm9 = vweird.f32 %v901_v51 }
 0x2bf   :  { %vm561_vm11 = vmor %vm559_vm10, %vm560_vm9 }
 0x2c0   :  { %v556_v53 = vsub.f32 1.0, %v555_v52 }
 0x2c2   :  { %v557_v55 = vmul.f32 %v901_v51, %v556_v53  ;;  %v861_v53 = vld [vmem:[#allocation7 + $0x70] ss:$0 sm:$0xff] }
 0x2c4   :  { %v558_v56 = vadd.f32 %v901_v51, %v557_v55 }
 0x2c6   :  { %v562_v59 = vsel %vm561_vm11, %v901_v51, %v558_v56  ;;  %v739_v51 = vpop.f32.mrf.mxu1 }
 0x2c7   :  { %v567_v61 = vsel %vm564_vm12, %v566_v60, %v562_v59 }
 0x2c8   :  { %v574_v1 = vmul.f32 %v572_v0, %v567_v61 }
 0x325   :  { %v577_v62 = vpop.permute.xlu0 %576 }
 0x326   :  { %v579_v63 = vmul.f32 %v577_v62, %v567_v61 }
 0x328   :  { %581 = vrot.lane.b32.xlu2 %v579_v63, %s1021_s1 }
 0x382   :  { %v582_v2 = vpop.permute.xlu2 %581 }
 0x383   :  { %v584_v3 = vadd.f32 %v582_v2, %v574_v1 }
 0x385   :  { %902 = vtanh.f32 %v584_v3 }
 0x38b   :  { %v903_v4 = vpop.eup %902 }
 0x38c   :  { %587 = vrot.lane.b32.xlu0 %v903_v4, %s1022_s26 }
 0x394   :  { %675 = vrot.lane.b32.xlu0 %v77_v12, %s1021_s1 }
 0x3fe   :  { %v588_v10 = vpop.permute.xlu0 %587 }
 0x3ff   :  { %v590_v11 = vmul.f32 %v588_v10, %v567_v61 }
 0x401   :  { %592 = vrot.lane.b32.xlu1 %v590_v11, %s1021_s1 }
 0x406   :  { %v676_v37 = vpop.permute.xlu0 %675 }
 0x473   :  { %v593_v14 = vpop.permute.xlu1 %592 }
 0x474   :  { %595 = vst.msk [vmem:[%s1220_s7] sm:$0xff] %vm143_vm0, %v593_v14  ;;  %837 = vmatmul.msk.f32.vlgmr.msrb.gmra.mxu0 %vm143_vm0, %v593_v14 }
 0x475   :  { %778 = vmatpush.msrb.mxu0 %v720_v48 }
 0x477   :  { %779 = vmatpush.msrb.mxu0 %v719_v9 }
 0x4f1   :  { %v649_v22 = vpop.f32.mrf.mxu0 }
 0x4f2   :  { %v650_v23 = vadd.f32 %v649_v22, %v627_v13 }
 0x4f4   :  { %v653_v24 = vadd.f32 %v860_v21, %v650_v23 }
 0x4f6   :  { %904 = vtanh.f32 %v653_v24  ;;  %v838_v26 = vmul.f32 -1.442695, %v653_v24 }
 0x4f8   :  { %906 = vpow2.f32 %v838_v26 }
 0x4fc   :  { %v905_v25 = vpop.eup %904 }
 0x4fd   :  { %680 = vrot.lane.b32.xlu2 %v905_v25, %s1022_s26 }
 0x4fe   :  { %v907_v27 = vpop.eup %906 }
 0x4ff   :  { %v657_v16 = vadd.f32 1.0, %v907_v27 }
 0x501   :  { %908 = vrcp.f32 %v657_v16  ;;  %v669_v17 = vand.u32 2147483648, %v657_v16  ;;  %vm663_vm14 = vweird.f32 %v657_v16  ;;  %v667_v32 = vand.u32 2147483647, %v657_v16 }
 0x503   :  { %v670_v34 = vor.u32 1.1754944e-38, %v669_v17  ;;  %vm668_vm1 = vcmp.eq.f32.partialorder %v667_v32, 8.507059e+37 }
 0x507   :  { %v909_v28 = vpop.eup %908 }
 0x508   :  { %v659_v15 = vmul.f32 %v909_v28, %v657_v16  ;;  %vm664_vm13 = vweird.f32 %v909_v28 }
 0x509   :  { %vm665_vm15 = vmor %vm663_vm14, %vm664_vm13 }
 0x50a   :  { %v660_v29 = vsub.f32 1.0, %v659_v15 }
 0x50c   :  { %v661_v30 = vmul.f32 %v909_v28, %v660_v29 }
 0x50e   :  { %v662_v31 = vadd.f32 %v909_v28, %v661_v30 }
 0x510   :  { %v666_v33 = vsel %vm665_vm15, %v909_v28, %v662_v31 }
 0x511   :  { %v671_v35 = vsel %vm668_vm1, %v670_v34, %v666_v33 }
 0x512   :  { %v678_v38 = vmul.f32 %v676_v37, %v671_v35 }
 0x557   :  { %v681_v18 = vpop.permute.xlu2 %680 }
 0x558   :  { %v683_v36 = vmul.f32 %v681_v18, %v671_v35 }
 0x55a   :  { %685 = vrot.lane.b32.xlu1 %v683_v36, %s1021_s1 }
 0x562   :  { %597 = vrot.lane.b32.xlu1 %v584_v3, %s1023_s2 }
 0x5cc   :  { %v686_v20 = vpop.permute.xlu1 %685 }
 0x5cd   :  { %v688_v19 = vadd.f32 %v686_v20, %v678_v38 }
 0x5cf   :  { %910 = vtanh.f32 %v688_v19 }
 0x5d4   :  { %v598_v39 = vpop.permute.xlu1 %597 }
 0x5d5   :  { %v911_v40 = vpop.eup %910  ;;  %600 = vst.msk [vmem:[%s1221_s8] sm:$0xff] %vm143_vm0, %v598_v39 }
 0x5d6   :  { %691 = vrot.lane.b32.xlu2 %v911_v40, %s1022_s26 }
 0x5de   :  { %702 = vrot.lane.b32.xlu2 %v688_v19, %s1023_s2 }
 0x630   :  { %v692_v45 = vpop.permute.xlu2 %691 }
 0x631   :  { %v694_v46 = vmul.f32 %v692_v45, %v671_v35 }
 0x633   :  { %696 = vrot.lane.b32.xlu0 %v694_v46, %s1021_s1 }
 0x638   :  { %v703_v47 = vpop.permute.xlu2 %702 }
 0x639   :  { %840 = vst.msk [vmem:[%s1221_s8 + $0x8] sm:$0xff] %vm143_vm0, %v703_v47  ;;  %s1024_s8 = smov [#allocation8]  }
 0x63a   :  { %s793_s15 = sshll.u32 %s1024_s8, 4  ;;  %s794_s15 = int_to_ptr.vmem [resolvable:$true] %s793_s15 }
 0x6a5   :  { %v697_v49 = vpop.permute.xlu0 %696 }
 0x6a6   :  { %839 = vst.msk [vmem:[%s1220_s7 + $0x8] sm:$0xff] %vm143_vm0, %v697_v49  ;;  %842 = vmatmul.msk.f32.vlgmr.msra.gmra.mxu0 %vm143_vm0, %v697_v49 }
 0x6ae   :  { %843 = vmatmul.msk.f32.vlgmr.msrb.gmra.mxu0 %vm500_vm8, %v1146_v54 }
 0x723   :  { %v761_v50 = vpop.f32.mrf.mxu0 }
 0x724   :  { %v762_v52 = vadd.f32 %v761_v50, %v739_v51 }
 0x72b   :  { %v781_v55 = vpop.f32.mrf.mxu0 }
 0x72c   :  { %v784_v56 = vadd.f32 %v781_v55, %v762_v52 }
 0x72e   :  { %v786_v57 = vadd.f32 %v861_v53, %v784_v56 }
 0x730   :  { %787 = vst [vmem:[#allocation8] sm:$0xff] %v786_v57 }
 0x731   :  { %798 = dma.vmem_to_hbm [thread:$0]  %s794_s15, 128, %s796_s18, [#allocation4]  }
 0x732   :  { %1012 = dma.done.wait [#allocation4], 128  }
 0x733   :  { %1013 = vsyncadd [#allocation4], 4294967168 }
 0x734   :  { %811 = vsyncpa [#allocation3], 1 }
 0x735   :  { %812 = vsyncpa [#allocation6], 1 }
 0x736   :  { %813 = vsyncpa [#allocation4], 1 }

</bundles_post_ra>
